<compile_context>
chip_gen: v7x
topology: tpu7x:2x2x1
jax: 0.10.0
libtpu: 0.0.40
codegen_flags: <defaults>
</compile_context>

<pallas_src>
import functools

import jax
import jax.numpy as jnp
from jax import lax
from jax.experimental import pallas as pl
from jax.experimental.pallas import tpu as pltpu

_KMAX = 5  # largest branch kernel (5x5); H halo = _KMAX - 1 = 4 rows


# --------------------------------------------------------------------------- #
# Kernel
# --------------------------------------------------------------------------- #
def _residual_kernel(x_ref, w_ref, b_ref, o_ref, xpad_ref, *, B, H, W, C, K):
    """Fused (folded) 3-branch conv + bias + sigmoid as one MXU matmul.

    x_ref    : (B*H, W*C)          unpadded NHWC input, flattened lane-dense
    w_ref    : (K*W*C, W*C)        banded im2col weight (BN, branches, W-padding folded)
    b_ref    : (1, W*C)            per-channel bias tiled across W
    o_ref    : (B*H, W*C)          sigmoid(conv(x)), lane-dense
    xpad_ref : (B*(H+K-1), W*C)    VMEM scratch: input zero-padded along H only
    """
    Hp = H + K - 1
    WC = W * C
    pad = (K - 1) // 2

    # ---- H halo only: zero scratch, copy each image at sublane offset `pad`.
    #      (W halo is baked into the banded weight at init -> every store/read
    #       here is a full, aligned 128-lane tile.)
    xpad_ref[...] = jnp.zeros_like(xpad_ref)
    x = x_ref[...]
    for b in range(B):
        xpad_ref[b * Hp + pad:b * Hp + pad + H, :] = x[b * H:(b + 1) * H, :]

    # ---- im2col LHS: K full-width row slabs concatenated along lanes.
    #      lhs[(b,h), dh*W*C + w'*C + ci] = xpadH[b, h+dh, w', ci]
    slabs = []
    for dh in range(K):
        rows = [xpad_ref[b * Hp + dh:b * Hp + dh + H, :] for b in range(B)]
        slabs.append(rows[0] if B == 1 else jnp.concatenate(rows, axis=0))
    lhs = slabs[0] if K == 1 else jnp.concatenate(slabs, axis=1)  # (B*H, K*W*C)

    # ---- one lane-dense matmul + bias + sigmoid, unmasked full-lane store ----
    y = jnp.dot(lhs, w_ref[...], preferred_element_type=jnp.float32)
    y = y + b_ref[...].astype(jnp.float32)
    o_ref[...] = jax.nn.sigmoid(y).astype(o_ref.dtype)


def _full_spec(shape):
    # whole-array block (problem is tiny: everything fits comfortably in VMEM)
    return pl.BlockSpec(shape, lambda: tuple(0 for _ in shape))


@jax.jit
def residual_forward(x_nchw, w_banded, bias_row):
    """x_nchw: (B, 8, H, W) float32.  w_banded / bias_row from prepare_params()."""
    B, C, H, W = x_nchw.shape
    K = _KMAX
    # NCHW -> lane-dense (B*H, W*C).  The transpose is the price of the NCHW
    # interface; a producer emitting NHWC directly would make it disappear.
    x2d = jnp.transpose(x_nchw, (0, 2, 3, 1)).reshape(B * H, W * C)

    out2d = pl.pallas_call(
        functools.partial(_residual_kernel, B=B, H=H, W=W, C=C, K=K),
        out_shape=jax.ShapeDtypeStruct((B * H, W * C), x_nchw.dtype),
        in_specs=[
            _full_spec((B * H, W * C)),
            _full_spec(w_banded.shape),
            _full_spec(bias_row.shape),
        ],
        out_specs=_full_spec((B * H, W * C)),
        scratch_shapes=[pltpu.VMEM((B * (H + K - 1), W * C), jnp.float32)],
        # Single invocation (no grid): ~0.4 MB total VMEM footprint.  If shapes
        # grow, tile (B*H) with a grid axis and
        # compiler_params=pltpu.CompilerParams(dimension_semantics=("parallel",))
        # so both v7x TensorCores split the rows; re-check tiles vs 64 MiB VMEM.
    )(x2d, w_banded, bias_row)

    return jnp.transpose(out2d.reshape(B, H, W, C), (0, 3, 1, 2))  # -> NCHW


# --------------------------------------------------------------------------- #
# One-time (init) parameter preparation — NOT in the per-call hot path
# --------------------------------------------------------------------------- #
def _fold_bn(w_oihw, b, gamma, beta, running_mean, running_var, eps=1e-5):
    """Fold eval-mode BatchNorm into conv weight/bias.
    w_oihw: (Cout, Cin, kh, kw) PyTorch layout -> (kh, kw, Cin, Cout), (Cout,)."""
    scale = gamma / jnp.sqrt(running_var + eps)
    w_folded = w_oihw * scale[:, None, None, None]
    b_folded = (b - running_mean) * scale + beta
    return jnp.transpose(w_folded, (2, 3, 1, 0)), b_folded


def _combine_branches(w3, b3, w5, b5, w1, b1):
    """Fold 3x3 and 1x1 branches into the centre of the 5x5 kernel (exact:
    all branches are stride-1 'same' convs on the same output grid)."""
    wc = (w5
          + jnp.pad(w3, ((1, 1), (1, 1), (0, 0), (0, 0)))
          + jnp.pad(w1, ((2, 2), (2, 2), (0, 0), (0, 0))))
    return wc, b3 + b5 + b1


def _build_banded_weight(wc, W):
    """Expand the combined (K, K, Cin, Cout) kernel into the banded im2col
    matrix G, shape (K*W*Cin, W*Cout), with W 'same' zero-padding folded in:
      G[dh*W*Cin + wp*Cin + ci, w*Cout + co] = wc[dh, wp - w + pad, ci, co]
    when 0 <= wp - w + pad < K, else 0."""
    K, _, Cin, Cout = wc.shape
    pad = (K - 1) // 2
    wp = jnp.arange(W)[:, None]                          # input column
    wout = jnp.arange(W)[None, :]                        # output column
    dw = wp - wout + pad                                 # (W, W)
    valid = (dw >= 0) & (dw < K)
    g = wc[:, jnp.clip(dw, 0, K - 1)]                    # (K, W, W, Cin, Cout)
    g = jnp.where(valid[None, :, :, None, None], g, 0.0)
    g = jnp.transpose(g, (0, 1, 3, 2, 4))                # (K, W_in, Cin, W_out, Cout)
    return g.reshape(K * W * Cin, W * Cout)


def prepare_params(w3, b3, w5, b5, w1, b1, W):
    """Combine the three branches, band the weight, tile the bias across W."""
    wc, bc = _combine_branches(w3, b3, w5, b5, w1, b1)
    w_banded = _build_banded_weight(wc, W)
    bias_row = jnp.tile(bc, (W,)).reshape(1, W * bc.shape[0])
    return w_banded, bias_row


def _init_params(key, cin=8, cout=8):
    ks = jax.random.split(key, 6)

    def conv_init(kw_key, kb_key, k):
        fan_in = cin * k * k
        bound = 1.0 / jnp.sqrt(fan_in)
        w = jax.random.uniform(kw_key, (cout, cin, k, k), jnp.float32, -bound, bound)
        b = jax.random.uniform(kb_key, (cout,), jnp.float32, -bound, bound)
        return w, b

    w3, b3 = conv_init(ks[0], ks[1], 3)
    w5, b5 = conv_init(ks[2], ks[3], 5)
    w1, b1 = conv_init(ks[4], ks[5], 1)
    # BatchNorm2d defaults: gamma=1, beta=0, running_mean=0, running_var=1
    gamma = jnp.ones((cout,), jnp.float32)
    beta = jnp.zeros((cout,), jnp.float32)
    rmean = jnp.zeros((cout,), jnp.float32)
    rvar = jnp.ones((cout,), jnp.float32)
    # TODO(synk): training-mode Dropout(p=0.1) / batch-stat BN not modeled (eval semantics).
    w3f, b3f = _fold_bn(w3, b3, gamma, beta, rmean, rvar)
    w5f, b5f = _fold_bn(w5, b5, gamma, beta, rmean, rvar)
    w1f, b1f = _fold_bn(w1, b1, gamma, beta, rmean, rvar)
    return (w3f, b3f, w5f, b5f, w1f, b1f)


def _reference(x_nchw, w3, b3, w5, b5, w1, b1):
    """Pure-JAX reference (lax.conv per branch) for correctness checking."""
    def conv(x, w, b, pad):
        x_nhwc = jnp.transpose(x, (0, 2, 3, 1))
        y = lax.conv_general_dilated(
            x_nhwc, w, window_strides=(1, 1),
            padding=((pad, pad), (pad, pad)),
            dimension_numbers=("NHWC", "HWIO", "NHWC"))
        y = y + b
        return jnp.transpose(y, (0, 3, 1, 2))
    y = conv(x_nchw, w3, b3, 1) + conv(x_nchw, w5, b5, 2) + conv(x_nchw, w1, b1, 0)
    return jax.nn.sigmoid(y)


if __name__ == "__main__":
    key = jax.random.PRNGKey(0)
    kx, kp = jax.random.split(key)

    B, C, H, W = 2, 8, 16, 16          # module fixes in/out channels at 8
    x = jax.random.normal(kx, (B, C, H, W), jnp.float32)
    params = _init_params(kp)

    w_banded, bias_row = jax.block_until_ready(prepare_params(*params, W=W))

    out = jax.block_until_ready(residual_forward(x, w_banded, bias_row))

    ref = jax.block_until_ready(_reference(x, *params))
    assert out.shape == (B, C, H, W)
    # tolerance leaves headroom for MXU precision-mode differences between the
    # Pallas matmul and the XLA conv reference (real bugs are orders larger)
    assert jnp.max(jnp.abs(out - ref)) < 1e-3, "kernel mismatch vs reference"

    print("KERNEL_OK")
</pallas_src>

<mosaic_0001>
module attributes {stable_mosaic.version = 11 : i64} {
  func.func @_residual_kernel(%arg0: memref<32x128xf32, #tpu.memory_space<vmem>>, %arg1: memref<640x128xf32, #tpu.memory_space<vmem>>, %arg2: memref<1x128xf32, #tpu.memory_space<vmem>>, %arg3: memref<32x128xf32, #tpu.memory_space<vmem>>, %arg4: memref<40x128xf32, #tpu.memory_space<vmem>>) attributes {dimension_semantics = [], scalar_prefetch = 0 : i64, scratch_operands = 1 : i64, tpu.core_type = #tpu.core_type<tc>} {
    %cst = arith.constant 0.000000e+00 : f32
    %0 = vector.broadcast %cst : f32 to vector<40x128xf32>
    %c0 = arith.constant 0 : index
    %c0_0 = arith.constant 0 : index
    %1 = vector.load %arg4[%c0, %c0_0] : memref<40x128xf32, #tpu.memory_space<vmem>>, vector<40x128xf32>
    tpu.vector_store %arg4[%c0, %c0_0], %0 {strides = array<i32>} : memref<40x128xf32, #tpu.memory_space<vmem>>, vector<40x128xf32>,
    %c0_1 = arith.constant 0 : index
    %c0_2 = arith.constant 0 : index
    %2 = vector.load %arg0[%c0_1, %c0_2] : memref<32x128xf32, #tpu.memory_space<vmem>>, vector<32x128xf32>
    %3 = vector.extract_strided_slice %2 {offsets = [0, 0], sizes = [16, 128], strides = [1, 1]} : vector<32x128xf32> to vector<16x128xf32>
    %c2 = arith.constant 2 : index
    %c0_3 = arith.constant 0 : index
    %4 = vector.load %arg4[%c2, %c0_3] : memref<40x128xf32, #tpu.memory_space<vmem>>, vector<16x128xf32>
    tpu.vector_store %arg4[%c2, %c0_3], %3 {strides = array<i32>} : memref<40x128xf32, #tpu.memory_space<vmem>>, vector<16x128xf32>,
    %5 = vector.extract_strided_slice %2 {offsets = [16, 0], sizes = [16, 128], strides = [1, 1]} : vector<32x128xf32> to vector<16x128xf32>
    %c22 = arith.constant 22 : index
    %c0_4 = arith.constant 0 : index
    %6 = vector.load %arg4[%c22, %c0_4] : memref<40x128xf32, #tpu.memory_space<vmem>>, vector<16x128xf32>
    tpu.vector_store %arg4[%c22, %c0_4], %5 {strides = array<i32>} : memref<40x128xf32, #tpu.memory_space<vmem>>, vector<16x128xf32>,
    %c0_5 = arith.constant 0 : index
    %c0_6 = arith.constant 0 : index
    %7 = vector.load %arg4[%c0_5, %c0_6] : memref<40x128xf32, #tpu.memory_space<vmem>>, vector<16x128xf32>
    %c20 = arith.constant 20 : index
    %c0_7 = arith.constant 0 : index
    %8 = vector.load %arg4[%c20, %c0_7] : memref<40x128xf32, #tpu.memory_space<vmem>>, vector<16x128xf32>
    %9 = tpu.concatenate %7, %8 in 0 : vector<16x128xf32>, vector<16x128xf32> -> vector<32x128xf32>
    %c1 = arith.constant 1 : index
    %c0_8 = arith.constant 0 : index
    %10 = vector.load %arg4[%c1, %c0_8] : memref<40x128xf32, #tpu.memory_space<vmem>>, vector<16x128xf32>
    %c21 = arith.constant 21 : index
    %c0_9 = arith.constant 0 : index
    %11 = vector.load %arg4[%c21, %c0_9] : memref<40x128xf32, #tpu.memory_space<vmem>>, vector<16x128xf32>
    %12 = tpu.concatenate %10, %11 in 0 : vector<16x128xf32>, vector<16x128xf32> -> vector<32x128xf32>
    %c2_10 = arith.constant 2 : index
    %c0_11 = arith.constant 0 : index
    %13 = vector.load %arg4[%c2_10, %c0_11] : memref<40x128xf32, #tpu.memory_space<vmem>>, vector<16x128xf32>
    %c22_12 = arith.constant 22 : index
    %c0_13 = arith.constant 0 : index
    %14 = vector.load %arg4[%c22_12, %c0_13] : memref<40x128xf32, #tpu.memory_space<vmem>>, vector<16x128xf32>
    %15 = tpu.concatenate %13, %14 in 0 : vector<16x128xf32>, vector<16x128xf32> -> vector<32x128xf32>
    %c3 = arith.constant 3 : index
    %c0_14 = arith.constant 0 : index
    %16 = vector.load %arg4[%c3, %c0_14] : memref<40x128xf32, #tpu.memory_space<vmem>>, vector<16x128xf32>
    %c23 = arith.constant 23 : index
    %c0_15 = arith.constant 0 : index
    %17 = vector.load %arg4[%c23, %c0_15] : memref<40x128xf32, #tpu.memory_space<vmem>>, vector<16x128xf32>
    %18 = tpu.concatenate %16, %17 in 0 : vector<16x128xf32>, vector<16x128xf32> -> vector<32x128xf32>
    %c4 = arith.constant 4 : index
    %c0_16 = arith.constant 0 : index
    %19 = vector.load %arg4[%c4, %c0_16] : memref<40x128xf32, #tpu.memory_space<vmem>>, vector<16x128xf32>
    %c24 = arith.constant 24 : index
    %c0_17 = arith.constant 0 : index
    %20 = vector.load %arg4[%c24, %c0_17] : memref<40x128xf32, #tpu.memory_space<vmem>>, vector<16x128xf32>
    %21 = tpu.concatenate %19, %20 in 0 : vector<16x128xf32>, vector<16x128xf32> -> vector<32x128xf32>
    %22 = tpu.concatenate %9, %12, %15, %18, %21 in 1 : vector<32x128xf32>, vector<32x128xf32>, vector<32x128xf32>, vector<32x128xf32>, vector<32x128xf32> -> vector<32x640xf32>
    %c0_18 = arith.constant 0 : index
    %c0_19 = arith.constant 0 : index
    %23 = vector.load %arg1[%c0_18, %c0_19] : memref<640x128xf32, #tpu.memory_space<vmem>>, vector<640x128xf32>
    %cst_20 = arith.constant dense<0.000000e+00> : vector<32x128xf32>
    %24 = tpu.matmul %22, %23, %cst_20 {dimension_numbers = #tpu.dot_dimension_numbers<[1], [0], [0], [1], [0, 0, 1, 1], [], []>} : vector<32x640xf32>, vector<640x128xf32>, vector<32x128xf32> -> vector<32x128xf32>
    %c0_21 = arith.constant 0 : index
    %c0_22 = arith.constant 0 : index
    %25 = vector.load %arg2[%c0_21, %c0_22] : memref<1x128xf32, #tpu.memory_space<vmem>>, vector<1x128xf32>
    %26 = vector.broadcast %25 : vector<1x128xf32> to vector<32x128xf32>
    %27 = arith.addf %24, %26 : vector<32x128xf32>
    %28 = arith.negf %27 : vector<32x128xf32>
    %29 = math.exp %28 : vector<32x128xf32>
    %cst_23 = arith.constant 1.000000e+00 : f32
    %30 = vector.broadcast %cst_23 : f32 to vector<32x128xf32>
    %31 = arith.addf %30, %29 : vector<32x128xf32>
    %32 = arith.divf %30, %31 : vector<32x128xf32>
    %c0_24 = arith.constant 0 : index
    %c0_25 = arith.constant 0 : index
    %33 = vector.load %arg3[%c0_24, %c0_25] : memref<32x128xf32, #tpu.memory_space<vmem>>, vector<32x128xf32>
    tpu.vector_store %arg3[%c0_24, %c0_25], %32 {strides = array<i32>} : memref<32x128xf32, #tpu.memory_space<vmem>>, vector<32x128xf32>,
    return
  }
}

</mosaic_0001>

<bundles_post_ra>
// kernel: residual_forward.1
= control target key start
LH: loop header
LB: loop body
LE: loop exit
PB: predicated region body
PF: predicated region fallthrough
CT: control target
= control target key end

     0   :  { %v701_v3 = vmov 0.0   ;;  %s997_s1 = inlined_call_operand.vmem [shape: f32[640,128], index: 1, kind: input, shape index: {}]   ;;  %s998_s0 = inlined_call_operand.vmem [shape: f32[32,128], index: 0, kind: input, shape index: {}]   ;;  %s999_s2 = inlined_call_operand.vmem [shape: f32[1,128], index: 2, kind: input, shape index: {}]   ;;  %s1000_s3 = inlined_call_operand.vmem [shape: f32[32,128], index: 3, kind: output, shape index: {}]  }
   0x1   :  { %v63_v0 = vld [vmem:[%s997_s1 + $0x80] sm:$0xff]  ;;  %v64_v1 = vld [vmem:[%s997_s1 + $0x88] sm:$0xff]  ;;  %14 = vst [vmem:[#allocation2] sm:$0xff] %v701_v3  ;;  %15 = vst [vmem:[#allocation2 + $0x8] sm:$0xff] %v701_v3 }
   0x2   :  { %v95_v2 = vld [vmem:[%s997_s1 + $0x180] sm:$0xff]  ;;  %16 = vst [vmem:[#allocation2 + $0x10] sm:$0xff] %v701_v3  ;;  %17 = vst [vmem:[#allocation2 + $0x18] sm:$0xff] %v701_v3  ;;  %v572_v4 = vpack.c.bf16 %v64_v1, %v63_v0  ;;  %v96_v5 = vld [vmem:[%s997_s1 + $0x188] sm:$0xff] }
   0x3   :  { %18 = vst [vmem:[#allocation2 + $0x20] sm:$0xff] %v701_v3  ;;  %v47_v6 = vld [vmem:[%s997_s1] sm:$0xff]  ;;  %v48_v7 = vld [vmem:[%s997_s1 + $0x8] sm:$0xff]  ;;  %v604_v8 = vpack.c.bf16 %v96_v5, %v95_v2  ;;  %v65_v12 = vld [vmem:[%s997_s1 + $0x90] sm:$0xff] }
   0x4   :  { %v574_v9 = vpack.c.bf16 %v48_v7, %v47_v6  ;;  %v79_v10 = vld [vmem:[%s997_s1 + $0x100] sm:$0xff]  ;;  %v80_v11 = vld [vmem:[%s997_s1 + $0x108] sm:$0xff]  ;;  %573 = vmatprep.subr.bf16.mxu0 %v572_v4  ;;  %v66_v14 = vld [vmem:[%s997_s1 + $0x98] sm:$0xff] }
   0x5   :  { %v606_v13 = vpack.c.bf16 %v80_v11, %v79_v10  ;;  %v97_v15 = vld [vmem:[%s997_s1 + $0x190] sm:$0xff]  ;;  %v98_v16 = vld [vmem:[%s997_s1 + $0x198] sm:$0xff]  ;;  %605 = vmatprep.subr.bf16.mxu1 %v604_v8  ;;  %v576_v17 = vpack.c.bf16 %v66_v14, %v65_v12  ;;  %v67_v24 = vld [vmem:[%s997_s1 + $0xa0] sm:$0xff] }
   0x6   :  { %575 = vmatpush3.bf16.msra.mxu0 %v574_v9  ;;  %v608_v18 = vpack.c.bf16 %v98_v16, %v97_v15  ;;  %v49_v19 = vld [vmem:[%s997_s1 + $0x10] sm:$0xff]  ;;  %v50_v20 = vld [vmem:[%s997_s1 + $0x18] sm:$0xff]  ;;  %v68_v25 = vld [vmem:[%s997_s1 + $0xa8] sm:$0xff] }
   0x7   :  { %v81_v21 = vld [vmem:[%s997_s1 + $0x110] sm:$0xff]  ;;  %607 = vmatpush3.bf16.msra.mxu1 %v606_v13  ;;  %v578_v22 = vpack.c.bf16 %v50_v20, %v49_v19  ;;  %v82_v23 = vld [vmem:[%s997_s1 + $0x118] sm:$0xff]  ;;  %577 = vmatprep.subr.bf16.mxu0 %v576_v17  ;;  %v580_v27 = vpack.c.bf16 %v68_v25, %v67_v24  ;;  %v99_v28 = vld [vmem:[%s997_s1 + $0x1a0] sm:$0xff] }
   0x8   :  { %609 = vmatprep.subr.bf16.mxu1 %v608_v18  ;;  %v610_v26 = vpack.c.bf16 %v82_v23, %v81_v21  ;;  %v100_v29 = vld [vmem:[%s997_s1 + $0x1a8] sm:$0xff]  ;;  %v51_v30 = vld [vmem:[%s997_s1 + $0x20] sm:$0xff]  ;;  %v69_v36 = vld [vmem:[%s997_s1 + $0xb0] sm:$0xff] }
   0x9   :  { %v612_v31 = vpack.c.bf16 %v100_v29, %v99_v28  ;;  %v52_v32 = vld [vmem:[%s997_s1 + $0x28] sm:$0xff]  ;;  %v83_v33 = vld [vmem:[%s997_s1 + $0x120] sm:$0xff]  ;;  %v70_v37 = vld [vmem:[%s997_s1 + $0xb8] sm:$0xff] }
   0xa   :  { %v84_v34 = vld [vmem:[%s997_s1 + $0x128] sm:$0xff]  ;;  %579 = vmatpush3.bf16.msra.mxu0 %v578_v22  ;;  %v582_v35 = vpack.c.bf16 %v52_v32, %v51_v30  ;;  %v101_v38 = vld [vmem:[%s997_s1 + $0x1b0] sm:$0xff]  ;;  %v584_v40 = vpack.c.bf16 %v70_v37, %v69_v36  ;;  %v102_v41 = vld [vmem:[%s997_s1 + $0x1b8] sm:$0xff] }
   0xb   :  { %611 = vmatpush3.bf16.msra.mxu1 %v610_v26  ;;  %581 = vmatprep.subr.bf16.mxu0 %v580_v27  ;;  %v614_v39 = vpack.c.bf16 %v84_v34, %v83_v33  ;;  %v53_v42 = vld [vmem:[%s997_s1 + $0x30] sm:$0xff]  ;;  %v54_v43 = vld [vmem:[%s997_s1 + $0x38] sm:$0xff]  ;;  %v616_v44 = vpack.c.bf16 %v102_v41, %v101_v38  ;;  %v71_v47 = vld [vmem:[%s997_s1 + $0xc0] sm:$0xff] }
   0xc   :  { %613 = vmatprep.subr.bf16.mxu1 %v612_v31  ;;  %v85_v45 = vld [vmem:[%s997_s1 + $0x130] sm:$0xff]  ;;  %v86_v46 = vld [vmem:[%s997_s1 + $0x138] sm:$0xff]  ;;  %v72_v48 = vld [vmem:[%s997_s1 + $0xc8] sm:$0xff]  ;;  %v586_v51 = vpack.c.bf16 %v54_v43, %v53_v42 }
   0xd   :  { %v103_v49 = vld [vmem:[%s997_s1 + $0x1c0] sm:$0xff]  ;;  %v104_v50 = vld [vmem:[%s997_s1 + $0x1c8] sm:$0xff]  ;;  %v618_v52 = vpack.c.bf16 %v86_v46, %v85_v45  ;;  %v588_v53 = vpack.c.bf16 %v72_v48, %v71_v47  ;;  %v73_v59 = vld [vmem:[%s997_s1 + $0xd0] sm:$0xff] }
   0xe   :  { %583 = vmatpush3.bf16.msra.mxu0 %v582_v35  ;;  %v55_v54 = vld [vmem:[%s997_s1 + $0x40] sm:$0xff]  ;;  %v56_v55 = vld [vmem:[%s997_s1 + $0x48] sm:$0xff]  ;;  %v620_v57 = vpack.c.bf16 %v104_v50, %v103_v49  ;;  %v74_v60 = vld [vmem:[%s997_s1 + $0xd8] sm:$0xff] }
   0xf   :  { %615 = vmatpush3.bf16.msra.mxu1 %v614_v39  ;;  %585 = vmatprep.subr.bf16.mxu0 %v584_v40  ;;  %v87_v56 = vld [vmem:[%s997_s1 + $0x140] sm:$0xff]  ;;  %v88_v58 = vld [vmem:[%s997_s1 + $0x148] sm:$0xff]  ;;  %v105_v61 = vld [vmem:[%s997_s1 + $0x1d0] sm:$0xff]  ;;  %v590_v63 = vpack.c.bf16 %v56_v55, %v55_v54  ;;  %v592_v1 = vpack.c.bf16 %v74_v60, %v73_v59 }
  0x10   :  { %617 = vmatprep.subr.bf16.mxu1 %v616_v44  ;;  %v106_v62 = vld [vmem:[%s997_s1 + $0x1d8] sm:$0xff]  ;;  %v622_v0 = vpack.c.bf16 %v88_v58, %v87_v56  ;;  %v57_v2 = vld [vmem:[%s997_s1 + $0x50] sm:$0xff]  ;;  %v75_v7 = vld [vmem:[%s997_s1 + $0xe0] sm:$0xff] }
  0x11   :  { %v58_v3 = vld [vmem:[%s997_s1 + $0x58] sm:$0xff]  ;;  %v89_v4 = vld [vmem:[%s997_s1 + $0x150] sm:$0xff]  ;;  %v624_v5 = vpack.c.bf16 %v106_v62, %v105_v61  ;;  %v76_v8 = vld [vmem:[%s997_s1 + $0xe8] sm:$0xff] }
  0x12   :  { %587 = vmatpush3.bf16.msra.mxu0 %v586_v51  ;;  %v90_v6 = vld [vmem:[%s997_s1 + $0x158] sm:$0xff]  ;;  %v107_v9 = vld [vmem:[%s997_s1 + $0x1e0] sm:$0xff]  ;;  %v108_v10 = vld [vmem:[%s997_s1 + $0x1e8] sm:$0xff]  ;;  %v594_v11 = vpack.c.bf16 %v58_v3, %v57_v2  ;;  %v596_v15 = vpack.c.bf16 %v76_v8, %v75_v7 }
  0x13   :  { %619 = vmatpush3.bf16.msra.mxu1 %v618_v52  ;;  %589 = vmatprep.subr.bf16.mxu0 %v588_v53  ;;  %v59_v12 = vld [vmem:[%s997_s1 + $0x60] sm:$0xff]  ;;  %v60_v13 = vld [vmem:[%s997_s1 + $0x68] sm:$0xff]  ;;  %v626_v14 = vpack.c.bf16 %v90_v6, %v89_v4  ;;  %v628_v19 = vpack.c.bf16 %v108_v10, %v107_v9  ;;  %v77_v21 = vld [vmem:[%s997_s1 + $0xf0] sm:$0xff] }
  0x14   :  { %621 = vmatprep.subr.bf16.mxu1 %v620_v57  ;;  %v91_v16 = vld [vmem:[%s997_s1 + $0x160] sm:$0xff]  ;;  %v893_v18 = vld [vmem:[%s998_s0 + $0x8] sm:$0xff]  ;;  %v78_v22 = vld [vmem:[%s997_s1 + $0xf8] sm:$0xff]  ;;  %v598_v25 = vpack.c.bf16 %v60_v13, %v59_v12 }
  0x15   :  { %v19_v17 = vld [vmem:[%s998_s0] sm:$0xff]  ;;  %v92_v20 = vld [vmem:[%s997_s1 + $0x168] sm:$0xff]  ;;  %24 = vst [vmem:[#allocation2 + $0xa] sm:$0xff] %v893_v18  ;;  %v109_v23 = vld [vmem:[%s997_s1 + $0x1f0] sm:$0xff]  ;;  %v600_v29 = vpack.c.bf16 %v78_v22, %v77_v21 }
  0x16   :  { %591 = vmatpush3.bf16.msra.mxu0 %v590_v63  ;;  %23 = vst [vmem:[#allocation2 + $0x2] sm:$0xff] %v19_v17  ;;  %v110_v24 = vld [vmem:[%s997_s1 + $0x1f8] sm:$0xff]  ;;  %v61_v26 = vld [vmem:[%s997_s1 + $0x70] sm:$0xff]  ;;  %v630_v28 = vpack.c.bf16 %v92_v20, %v91_v16  ;;  %v111_v34 = vld [vmem:[%s997_s1 + $0x200] sm:$0xff] }
  0x17   :  { %623 = vmatpush3.bf16.msra.mxu1 %v622_v0  ;;  %593 = vmatprep.subr.bf16.mxu0 %v592_v1  ;;  %v62_v27 = vld [vmem:[%s997_s1 + $0x78] sm:$0xff]  ;;  %v93_v30 = vld [vmem:[%s997_s1 + $0x170] sm:$0xff]  ;;  %v632_v33 = vpack.c.bf16 %v110_v24, %v109_v23  ;;  %v112_v35 = vld [vmem:[%s997_s1 + $0x208] sm:$0xff] }
  0x18   :  { %625 = vmatprep.subr.bf16.mxu1 %v624_v5  ;;  %v94_v31 = vld [vmem:[%s997_s1 + $0x178] sm:$0xff]  ;;  %v21_v32 = vld [vmem:[%s998_s0 + $0x10] sm:$0xff]  ;;  %v602_v37 = vpack.c.bf16 %v62_v27, %v61_v26  ;;  %v636_v41 = vpack.c.bf16 %v112_v35, %v111_v34  ;;  %v115_v46 = vld [vmem:[%s997_s1 + $0x220] sm:$0xff] }
  0x19   :  { %25 = vst [vmem:[#allocation2 + $0x16] sm:$0xff] %v21_v32  ;;  %v935_v36 = vld [vmem:[%s998_s0 + $0x18] sm:$0xff]  ;;  %v634_v38 = vpack.c.bf16 %v94_v31, %v93_v30  ;;  %v113_v42 = vld [vmem:[%s997_s1 + $0x210] sm:$0xff]  ;;  %v116_v47 = vld [vmem:[%s997_s1 + $0x228] sm:$0xff] }
  0x1a   :  { %595 = vmatpush3.bf16.msra.mxu0 %v594_v11  ;;  %26 = vst [vmem:[#allocation2 + $0x1e] sm:$0xff] %v935_v36  ;;  %v114_v43 = vld [vmem:[%s997_s1 + $0x218] sm:$0xff]  ;;  %v644_v51 = vpack.c.bf16 %v116_v47, %v115_v46  ;;  %v117_v52 = vld [vmem:[%s997_s1 + $0x230] sm:$0xff]  ;;  %v119_v58 = vld [vmem:[%s997_s1 + $0x240] sm:$0xff] }
  0x1b   :  { %627 = vmatpush3.bf16.msra.mxu1 %v626_v14  ;;  %597 = vmatprep.subr.bf16.mxu0 %v596_v15  ;;  %v640_v45 = vpack.c.bf16 %v114_v43, %v113_v42  ;;  %v118_v53 = vld [vmem:[%s997_s1 + $0x238] sm:$0xff]  ;;  %v120_v59 = vld [vmem:[%s997_s1 + $0x248] sm:$0xff]  ;;  %v121_v0 = vld [vmem:[%s997_s1 + $0x250] sm:$0xff] }
  0x1c   :  { %629 = vmatprep.subr.bf16.mxu1 %v628_v19  ;;  %v40_v50 = vld [vmem:[#allocation2 + $0xb] sm:$0xff]  ;;  %v648_v57 = vpack.c.bf16 %v118_v53, %v117_v52  ;;  %v652_v63 = vpack.c.bf16 %v120_v59, %v119_v58  ;;  %v122_v1 = vld [vmem:[%s997_s1 + $0x258] sm:$0xff]  ;;  %v123_v5 = vld [vmem:[%s997_s1 + $0x260] sm:$0xff] }
  0x1d   :  { %v31_v39 = vld [vmem:[#allocation2 + $0x1] sm:$0xff]  ;;  %v32_v48 = vld [vmem:[#allocation2 + $0x9] sm:$0xff]  ;;  %v656_v4 = vpack.c.bf16 %v122_v1, %v121_v0  ;;  %v126_v9 = vld [vmem:[%s997_s1 + $0x278] sm:$0xff] }
  0x1e   :  { %599 = vmatpush3.bf16.msra.mxu0 %v598_v25  ;;  %v39_v40 = vld [vmem:[#allocation2 + $0x3] sm:$0xff]  ;;  %198 = vmatprep.mubr.f32.mxu0 %v31_v39  ;;  %v125_v8 = vld [vmem:[%s997_s1 + $0x270] sm:$0xff]  ;;  %v421_v15 = vld [vmem:[%s999_s2] ss:$0 sm:$0xff] }
  0x1f   :  { %631 = vmatpush3.bf16.msra.mxu1 %v630_v28  ;;  %601 = vmatprep.subr.bf16.mxu0 %v600_v29  ;;  %v27_v44 = vld [vmem:[#allocation2] sm:$0xff]  ;;  %v28_v49 = vld [vmem:[#allocation2 + $0x8] sm:$0xff]  ;;  %v664_v10 = vpack.c.bf16 %v126_v9, %v125_v8 }
  0x20   :  { %633 = vmatprep.subr.bf16.mxu1 %v632_v33  ;;  %283 = vmatprep.mubr.f32.mxu1 %v39_v40  ;;  %v33_v54 = vld [vmem:[#allocation2 + $0x15] sm:$0xff]  ;;  %v43_v2 = vld [vmem:[#allocation2 + $0x4] sm:$0xff]  ;;  %v44_v11 = vld [vmem:[#allocation2 + $0xc] sm:$0xff] }
  0x21   :  { %v29_v55 = vld [vmem:[#allocation2 + $0x14] sm:$0xff]  ;;  %v34_v60 = vld [vmem:[#allocation2 + $0x1d] sm:$0xff]  ;;  %v124_v6 = vld [vmem:[%s997_s1 + $0x268] sm:$0xff] }
  0x22   :  { %603 = vmatpush3.bf16.msra.mxu0 %v602_v37  ;;  %v41_v56 = vld [vmem:[#allocation2 + $0x17] sm:$0xff]  ;;  %v42_v62 = vld [vmem:[#allocation2 + $0x1f] sm:$0xff]  ;;  %v660_v7 = vpack.c.bf16 %v124_v6, %v123_v5 }
  0x23   :  { %635 = vmatpush3.bf16.msra.mxu1 %v634_v38  ;;  %637 = vmatprep.subr.bf16.mxu0 %v636_v41  ;;  %v30_v61 = vld [vmem:[#allocation2 + $0x1c] sm:$0xff] }
  0x24   :  { %668 = vmatprep.subr.bf16.mxu1 %v636_v41  ;;  %v45_v3 = vld [vmem:[#allocation2 + $0x18] sm:$0xff]  ;;  %v46_v12 = vld [vmem:[#allocation2 + $0x20] sm:$0xff] }
  0x25   :  { %199 = vmatmul.mubr.f32.vlgmr.msra.gmra.mrb[0].mxu0 %v27_v44 }
  0x26   :  { %284 = vmatmul.mubr.f32.vlgmr.msra.gmra.mrb[0].mxu1 %v19_v17  ;;  %639 = vmatpush3.bf16.msra.mxu0 %v636_v41 }
  0x27   :  { %676 = vmatpush3.bf16.msra.mxu1 %v636_v41  ;;  %641 = vmatprep.subr.bf16.mxu0 %v640_v45 }
  0x28   :  { %669 = vmatprep.subr.bf16.mxu1 %v640_v45  ;;  %203 = vmatprep.mubr.f32.mxu0 %v32_v48 }
  0x29   :  { %204 = vmatmul.mubr.f32.gmra.mrb[2].mxu0 %v28_v49  ;;  %288 = vmatprep.mubr.f32.mxu1 %v40_v50 }
  0x2a   :  { %643 = vmatpush3.bf16.msra.mxu0 %v640_v45  ;;  %289 = vmatmul.mubr.f32.gmra.mrb[2].mxu1 %v893_v18 }
  0x2b   :  { %677 = vmatpush3.bf16.msra.mxu1 %v640_v45  ;;  %645 = vmatprep.subr.bf16.mxu0 %v644_v51 }
  0x2c   :  { %670 = vmatprep.subr.bf16.mxu1 %v644_v51  ;;  %208 = vmatprep.mubr.f32.mxu0 %v33_v54 }
  0x2d   :  { %209 = vmatmul.mubr.f32.gmra.mrb[4].mxu0 %v29_v55  ;;  %293 = vmatprep.mubr.f32.mxu1 %v41_v56 }
  0x2e   :  { %647 = vmatpush3.bf16.msra.mxu0 %v644_v51  ;;  %294 = vmatmul.mubr.f32.gmra.mrb[4].mxu1 %v21_v32 }
  0x2f   :  { %678 = vmatpush3.bf16.msra.mxu1 %v644_v51  ;;  %649 = vmatprep.subr.bf16.mxu0 %v648_v57 }
  0x30   :  { %671 = vmatprep.subr.bf16.mxu1 %v648_v57  ;;  %213 = vmatprep.mubr.f32.mxu0 %v34_v60 }
  0x31   :  { %214 = vmatmul.mubr.f32.gmra.mrb[6].mxu0 %v30_v61  ;;  %298 = vmatprep.mubr.f32.mxu1 %v42_v62 }
  0x32   :  { %651 = vmatpush3.bf16.msra.mxu0 %v648_v57  ;;  %299 = vmatmul.mubr.f32.gmra.mrb[6].mxu1 %v935_v36 }
  0x33   :  { %679 = vmatpush3.bf16.msra.mxu1 %v648_v57  ;;  %653 = vmatprep.subr.bf16.mxu0 %v652_v63 }
  0x34   :  { %672 = vmatprep.subr.bf16.mxu1 %v652_v63  ;;  %566 = vmatprep.mubr.f32.mxu0 %v43_v2 }
  0x35   :  { %569 = vmatprep.mubr.f32.mxu1 %v45_v3 }
  0x36   :  { %655 = vmatpush3.bf16.msra.mxu0 %v652_v63 }
  0x37   :  { %680 = vmatpush3.bf16.msra.mxu1 %v652_v63  ;;  %657 = vmatprep.subr.bf16.mxu0 %v656_v4 }
  0x38   :  { %673 = vmatprep.subr.bf16.mxu1 %v656_v4 }
  0x3a   :  { %659 = vmatpush3.bf16.msra.mxu0 %v656_v4 }
  0x3b   :  { %681 = vmatpush3.bf16.msra.mxu1 %v656_v4  ;;  %661 = vmatprep.subr.bf16.mxu0 %v660_v7 }
  0x3c   :  { %674 = vmatprep.subr.bf16.mxu1 %v660_v7 }
  0x3e   :  { %663 = vmatpush3.bf16.msra.mxu0 %v660_v7 }
  0x3f   :  { %682 = vmatpush3.bf16.msra.mxu1 %v660_v7  ;;  %665 = vmatprep.subr.bf16.mxu0 %v664_v10 }
  0x40   :  { %675 = vmatprep.subr.bf16.mxu1 %v664_v10 }
  0x42   :  { %667 = vmatpush3.bf16.msra.mxu0 %v664_v10 }
  0x43   :  { %683 = vmatpush3.bf16.msra.mxu1 %v664_v10 }
  0x45   :  { %567 = vmatmul.mubr.f32.vlgmr.msra.gmra.mrb[8].mxu0 %v44_v11 }
  0x46   :  { %570 = vmatmul.mubr.f32.vlgmr.msra.gmra.mrb[8].mxu1 %v46_v12 }
  0xf8   :  { %v458_v13 = vpop.f32.mrb[0].mxu0 }
  0xf9   :  { %v502_v14 = vpop.f32.mrb[0].mxu1  ;;  %v459_v16 = vpop.f32.mrb[1].mxu0 }
  0xfa   :  { %v460_v17 = vadd.f32 %v459_v16, %v458_v13  ;;  %v503_v18 = vpop.f32.mrb[1].mxu1 }
  0xfb   :  { %v504_v19 = vadd.f32 %v503_v18, %v502_v14 }
  0xfc   :  { %v201_v20 = vadd.f32 %v460_v17, %v421_v15  ;;  %v461_v21 = vpop.f32.mrb[2].mxu0 }
  0xfd   :  { %v462_v22 = vpop.f32.mrb[3].mxu0  ;;  %v505_v23 = vpop.f32.mrb[2].mxu1 }
  0xfe   :  { %v463_v24 = vadd.f32 %v462_v22, %v461_v21  ;;  %v506_v25 = vpop.f32.mrb[3].mxu1  ;;  %v286_v26 = vadd.f32 %v504_v19, %v201_v20 }
  0xff   :  { %v507_v27 = vadd.f32 %v506_v25, %v505_v23 }
 0x100   :  { %v206_v28 = vadd.f32 %v463_v24, %v421_v15  ;;  %v464_v29 = vpop.f32.mrb[4].mxu0 }
 0x101   :  { %v465_v30 = vpop.f32.mrb[5].mxu0  ;;  %v508_v31 = vpop.f32.mrb[4].mxu1 }
 0x102   :  { %v466_v32 = vadd.f32 %v465_v30, %v464_v29  ;;  %v509_v33 = vpop.f32.mrb[5].mxu1  ;;  %v291_v34 = vadd.f32 %v507_v27, %v206_v28 }
 0x103   :  { %v510_v35 = vadd.f32 %v509_v33, %v508_v31 }
 0x104   :  { %v211_v36 = vadd.f32 %v466_v32, %v421_v15  ;;  %v467_v37 = vpop.f32.mrb[6].mxu0 }
 0x105   :  { %v468_v38 = vpop.f32.mrb[7].mxu0  ;;  %v511_v39 = vpop.f32.mrb[6].mxu1 }
 0x106   :  { %v469_v40 = vadd.f32 %v468_v38, %v467_v37  ;;  %v512_v41 = vpop.f32.mrb[7].mxu1  ;;  %v296_v42 = vadd.f32 %v510_v35, %v211_v36 }
 0x107   :  { %v513_v43 = vadd.f32 %v512_v41, %v511_v39 }
 0x108   :  { %v216_v44 = vadd.f32 %v469_v40, %v421_v15 }
 0x10a   :  { %v301_v45 = vadd.f32 %v513_v43, %v216_v44 }
 0x118   :  { %v568_v46 = vpop.f32.mrb[8].mxu0 }
 0x119   :  { %v376_v47 = vadd.f32 %v568_v46, %v291_v34  ;;  %v571_v48 = vpop.f32.mrb[8].mxu1  ;;  %v370_v49 = vpop.f32.mrb[9].mxu0 }
 0x11a   :  { %v386_v50 = vadd.f32 %v571_v48, %v301_v45  ;;  %v371_v51 = vadd.f32 %v370_v49, %v286_v26  ;;  %v380_v52 = vpop.f32.mrb[9].mxu1 }
 0x11b   :  { %v423_v53 = vmul.f32 -1.442695, %v376_v47  ;;  %v381_v54 = vadd.f32 %v380_v52, %v296_v42 }
 0x11c   :  { %v425_v55 = vmul.f32 -1.442695, %v386_v50  ;;  %v422_v56 = vmul.f32 -1.442695, %v371_v51 }
 0x11d   :  { %685 = vpow2.f32 %v423_v53  ;;  %v424_v57 = vmul.f32 -1.442695, %v381_v54 }
 0x11e   :  { %687 = vpow2.f32 %v425_v55 }
 0x11f   :  { %689 = vpow2.f32 %v422_v56 }
 0x120   :  { %691 = vpow2.f32 %v424_v57 }
 0x127   :  { %v686_v58 = vpop.eup %685 }
 0x128   :  { %v688_v59 = vpop.eup %687  ;;  %v402_v60 = vadd.f32 1.0, %v686_v58 }
 0x129   :  { %v690_v61 = vpop.eup %689  ;;  %v404_v62 = vadd.f32 1.0, %v688_v59 }
 0x12a   :  { %v692_v63 = vpop.eup %691  ;;  %693 = vrcp.f32 %v402_v60  ;;  %v401_v0 = vadd.f32 1.0, %v690_v61 }
 0x12b   :  { %695 = vrcp.f32 %v404_v62  ;;  %v403_v1 = vadd.f32 1.0, %v692_v63 }
 0x12c   :  { %697 = vrcp.f32 %v401_v0 }
 0x12d   :  { %699 = vrcp.f32 %v403_v1 }
 0x134   :  { %v694_v2 = vpop.eup %693 }
 0x135   :  { %v696_v3 = vpop.eup %695  ;;  %414 = vst [vmem:[%s1000_s3 + $0x8] sm:$0xff] %v694_v2 }
 0x136   :  { %v698_v4 = vpop.eup %697  ;;  %416 = vst [vmem:[%s1000_s3 + $0x18] sm:$0xff] %v696_v3 }
 0x137   :  { %v700_v5 = vpop.eup %699  ;;  %413 = vst [vmem:[%s1000_s3] sm:$0xff] %v698_v4 }
 0x138   :  { %415 = vst [vmem:[%s1000_s3 + $0x10] sm:$0xff] %v700_v5 }

</bundles_post_ra>
